<compile_context>
chip_gen: v5e
topology: v5e:2x2
jax: 0.10.0
libtpu: 0.0.40
codegen_flags: <defaults>
</compile_context>

<pallas_src>
import functools

import jax
import jax.numpy as jnp
from jax import lax
from jax.experimental import pallas as pl
from jax.experimental.pallas import tpu as pltpu


_SQRT_HALF = 0.7071067811865476


def _gelu(x, approximate):
    if approximate:
        # gelu_new / tanh approximation (HF Phi-2 default); tanh goes to the EUP
        # slot, effectively free next to the MXU-bound inner loop.
        return jax.nn.gelu(x, approximate=True)
    # erf-based "exact" GELU -- matches the module's activation='gelu'.
    return 0.5 * x * (1.0 + lax.erf(x * _SQRT_HALF))


def phi_mlp_kernel(x_ref, w1_ref, b1_ref, w2t_ref, b2_ref, o_ref, acc_ref,
                   *, approximate_gelu):
    # Grid = (M tiles, I tiles); axis 1 reduces the intermediate dim into the
    # resident f32 accumulator.
    #   x_ref   : [tm, H]   activations (input dtype; cast to weight dtype here)
    #   w1_ref  : [tI, H]   fc1 weight rows, natural torch layout
    #   b1_ref  : [1, tI]   f32
    #   w2t_ref : [tI, H]   fc2 weight, pre-transposed once at weight-load time
    #   b2_ref  : [1, H]    f32
    #   o_ref   : [tm, H]
    #   acc_ref : [tm, H]   f32 accumulator scratch
    k = pl.program_id(1)

    @pl.when(k == 0)
    def _():
        acc_ref[...] = jnp.zeros_like(acc_ref)

    x = x_ref[...].astype(w1_ref.dtype)
    # h = x @ w1_slice.T  -- NT contraction, no transpose materialized.
    h = lax.dot_general(x, w1_ref[...],
                        dimension_numbers=(((1,), (1,)), ((), ())),
                        preferred_element_type=jnp.float32)
    h = _gelu(h + b1_ref[...], approximate_gelu)
    acc_ref[...] += jnp.dot(h.astype(w2t_ref.dtype), w2t_ref[...],
                            preferred_element_type=jnp.float32)

    @pl.when(k == pl.num_programs(1) - 1)
    def _():
        o_ref[...] = (acc_ref[...] + b2_ref[...]).astype(o_ref.dtype)


def _round_up(n, m):
    return ((n + m - 1) // m) * m


def _vmem_capacity_bytes():
    try:
        cap = getattr(pltpu.get_tpu_info(), "vmem_capacity_bytes", None)
        if cap:
            return int(cap)
    except Exception:
        pass
    return 64 << 20  # conservative fallback (v7x per-TensorCore VMEM)


def _pick_i_tile(i_pad, target):
    """Largest multiple of 128 <= target that divides i_pad (i_pad % 128 == 0)."""
    t = max(128, (min(target, i_pad) // 128) * 128)
    while t > 128 and i_pad % t != 0:
        t -= 128
    return t


def _vmem_footprint(tm, ti, hidden, x_bytes, w_bytes, out_bytes):
    # Double-buffered in/out tiles + biases + resident f32 accumulator.
    return (2 * tm * hidden * x_bytes            # x tile
            + 2 * 2 * ti * hidden * w_bytes      # fc1 + fc2 weight slices
            + 2 * (ti + hidden) * 4              # biases (f32)
            + 2 * tm * hidden * out_bytes        # output tile
            + tm * hidden * 4)                   # f32 accumulator scratch


def prepare_phi_mlp_params(params, compute_dtype=jnp.bfloat16):
    """One-time weight prep -- do this at weight-load time, NOT per forward call.

      * cast matmul weights to `compute_dtype` (bf16 default: MXU-native,
        halves weight HBM traffic; accumulation stays f32 in the kernel),
      * transpose fc2 once so both weight operands are contiguous [I, H]
        row slices inside the kernel,
      * zero-pad the intermediate axis to a multiple of 128 so a lane-aligned
        I tile always divides exactly (padded rows contribute exactly zero),
      * keep biases in f32 (added to the f32 accumulator).
    """
    w1, b1, w2, b2 = params
    intermediate, hidden = w1.shape
    assert w2.shape == (hidden, intermediate)

    i_pad = _round_up(intermediate, 128)
    w1p = jnp.asarray(w1).astype(compute_dtype)            # [I, H]
    w2tp = jnp.asarray(w2).T.astype(compute_dtype)          # [I, H]
    b1p = jnp.asarray(b1).astype(jnp.float32)
    if i_pad != intermediate:
        w1p = jnp.pad(w1p, ((0, i_pad - intermediate), (0, 0)))
        w2tp = jnp.pad(w2tp, ((0, i_pad - intermediate), (0, 0)))
        b1p = jnp.pad(b1p, (0, i_pad - intermediate))

    return dict(
        w1=w1p,                                  # [I_pad, H]
        b1=b1p.reshape(1, i_pad),                # [1, I_pad] f32
        w2t=w2tp,                                # [I_pad, H]
        b2=jnp.asarray(b2).astype(jnp.float32).reshape(1, hidden),
        hidden=hidden,
        intermediate=intermediate,
    )


def phi_mlp(x, params, *, tm=None, ti=None, approximate_gelu=False):
    """Phi-2 MLP forward: fc2(gelu(fc1(x))).

    `params` should be the dict from prepare_phi_mlp_params() (weight cast /
    transpose / padding hoisted to load time).  A raw torch-layout
    [fc1.w, fc1.b, fc2.w, fc2.b] list is accepted for convenience, but then the
    one-off prep cost is paid on every call.
    """
    if not isinstance(params, dict):
        params = prepare_phi_mlp_params(params)  # hoist this in real use!

    w1, b1, w2t, b2 = params["w1"], params["b1"], params["w2t"], params["b2"]
    hidden = params["hidden"]
    i_pad = w1.shape[0]

    orig_shape = x.shape
    xm = x.reshape(-1, hidden)
    m_tokens = xm.shape[0]

    x_bytes = jnp.dtype(xm.dtype).itemsize
    w_bytes = jnp.dtype(w1.dtype).itemsize
    out_bytes = jnp.dtype(x.dtype).itemsize

    capacity = _vmem_capacity_bytes()
    budget = int(capacity * 0.85)
    if tm is None:
        tm = 512                      # multiple of 256 -> fills 256x256 MXU
    if ti is None:
        ti = 2048 if capacity >= (100 << 20) else 1024

    tm_eff = max(8, min(_round_up(tm, 8), _round_up(m_tokens, 8)))
    ti_eff = _pick_i_tile(i_pad, ti)
    # Shrink tiles until the double-buffered footprint fits physical VMEM.
    while _vmem_footprint(tm_eff, ti_eff, hidden,
                          x_bytes, w_bytes, out_bytes) > budget:
        if ti_eff > 128:
            ti_eff = _pick_i_tile(i_pad, max(128, ti_eff // 2))
        elif tm_eff > 64:
            tm_eff = max(64, _round_up(tm_eff // 2, 8))
        else:
            break

    need = _vmem_footprint(tm_eff, ti_eff, hidden, x_bytes, w_bytes, out_bytes)
    vmem_limit = int(min(max(int(need * 1.2) + (4 << 20), 32 << 20),
                         capacity * 0.9))

    grid = (pl.cdiv(m_tokens, tm_eff), i_pad // ti_eff)

    kernel = functools.partial(phi_mlp_kernel, approximate_gelu=approximate_gelu)

    out = pl.pallas_call(
        kernel,
        out_shape=jax.ShapeDtypeStruct((m_tokens, hidden), x.dtype),
        grid_spec=pltpu.PrefetchScalarGridSpec(
            num_scalar_prefetch=0,
            grid=grid,
            in_specs=[
                pl.BlockSpec((tm_eff, hidden), lambda i, k: (i, 0)),   # x
                pl.BlockSpec((ti_eff, hidden), lambda i, k: (k, 0)),   # fc1 rows
                pl.BlockSpec((1, ti_eff), lambda i, k: (0, k)),        # fc1 bias
                pl.BlockSpec((ti_eff, hidden), lambda i, k: (k, 0)),   # fc2^T rows
                pl.BlockSpec((1, hidden), lambda i, k: (0, 0)),        # fc2 bias
            ],
            out_specs=pl.BlockSpec((tm_eff, hidden), lambda i, k: (i, 0)),
            scratch_shapes=[pltpu.VMEM((tm_eff, hidden), jnp.float32)],
        ),
        compiler_params=pltpu.CompilerParams(
            dimension_semantics=("parallel", "arbitrary"),
            vmem_limit_bytes=vmem_limit),
    )(xm, w1, b1, w2t, b2)

    return out.reshape(orig_shape)


def _ref(x, params, approximate=False):
    w1, b1, w2, b2 = params
    h = x @ w1.T + b1
    if approximate:
        h = jax.nn.gelu(h, approximate=True)
    else:
        h = 0.5 * h * (1.0 + lax.erf(h * _SQRT_HALF))
    return h @ w2.T + b2


if __name__ == "__main__":
    # Small shapes consistent with the module: batch=2, seq=8, hidden=32,
    # intermediate=128 (Phi-2 uses 4*hidden).
    batch, seq, hidden, intermediate = 2, 8, 32, 128
    key = jax.random.PRNGKey(0)
    k_x, k_w1, k_b1, k_w2, k_b2 = jax.random.split(key, 5)

    x = jax.random.normal(k_x, (batch, seq, hidden), dtype=jnp.float32)
    params = [
        jax.random.normal(k_w1, (intermediate, hidden), jnp.float32) * 0.05,
        jax.random.normal(k_b1, (intermediate,), jnp.float32) * 0.05,
        jax.random.normal(k_w2, (hidden, intermediate), jnp.float32) * 0.05,
        jax.random.normal(k_b2, (hidden,), jnp.float32) * 0.05,
    ]

    # 1) Exact-numerics check: f32 compute path vs. f32 reference.
    prep_f32 = prepare_phi_mlp_params(params, compute_dtype=jnp.float32)
    out = phi_mlp(x, prep_f32)
    jax.block_until_ready(out)
    ref = _ref(x, params)
    assert out.shape == x.shape
    assert jnp.allclose(out, ref, atol=2e-5, rtol=2e-5), (
        f"f32 max err {jnp.max(jnp.abs(out - ref))}")

    # 2) Default fast path: bf16 weights / bf16 MXU matmuls, f32 accumulation.
    prep_bf16 = prepare_phi_mlp_params(params)          # bf16 by default
    out_bf = phi_mlp(x, prep_bf16)
    jax.block_until_ready(out_bf)
    assert jnp.allclose(out_bf, ref, atol=3e-2, rtol=3e-2), (
        f"bf16 max err {jnp.max(jnp.abs(out_bf - ref))}")

    # 3) Ragged-M path (M=14 tokens, not a multiple of the row tile).
    x2 = x[:, :7, :]
    out2 = phi_mlp(x2, prep_f32)
    jax.block_until_ready(out2)
    ref2 = _ref(x2, params)
    assert out2.shape == x2.shape
    assert jnp.allclose(out2, ref2, atol=2e-5, rtol=2e-5), (
        f"ragged-M max err {jnp.max(jnp.abs(out2 - ref2))}")

    # 4) tanh-GELU option (HF Phi-2 gelu_new).
    out_tanh = phi_mlp(x, prep_f32, approximate_gelu=True)
    jax.block_until_ready(out_tanh)
    ref_tanh = _ref(x, params, approximate=True)
    assert jnp.allclose(out_tanh, ref_tanh, atol=2e-5, rtol=2e-5), (
        f"tanh-gelu max err {jnp.max(jnp.abs(out_tanh - ref_tanh))}")

    print("KERNEL_OK")
</pallas_src>

<mosaic_0001>
module attributes {stable_mosaic.version = 11 : i64} {
  func.func @phi_mlp_kernel(%arg0: i32, %arg1: i32, %arg2: memref<16x32xf32, #tpu.memory_space<vmem>>, %arg3: memref<128x32xf32, #tpu.memory_space<vmem>>, %arg4: memref<1x128xf32, #tpu.memory_space<vmem>>, %arg5: memref<128x32xf32, #tpu.memory_space<vmem>>, %arg6: memref<1x32xf32, #tpu.memory_space<vmem>>, %arg7: memref<16x32xf32, #tpu.memory_space<vmem>>, %arg8: memref<16x32xf32, #tpu.memory_space<vmem>>) attributes {dimension_semantics = [#tpu.dimension_semantics<parallel>, #tpu.dimension_semantics<arbitrary>], iteration_bounds = array<i64: 1, 1>, scalar_prefetch = 0 : i64, scratch_operands = 1 : i64, tpu.core_type = #tpu.core_type<tc>, window_params = [{transform_indices = @transform_0, window_bounds = array<i64: 16, 32>}, {transform_indices = @transform_1, window_bounds = array<i64: 128, 32>}, {transform_indices = @transform_2, window_bounds = array<i64: 1, 128>}, {transform_indices = @transform_3, window_bounds = array<i64: 128, 32>}, {pipeline_mode = #tpu.pipeline_mode<synchronous>, transform_indices = @transform_4, window_bounds = array<i64: 1, 32>}, {transform_indices = @transform_5, window_bounds = array<i64: 16, 32>}]} {
    %c0_i32 = arith.constant 0 : i32
    %0 = arith.cmpi eq, %arg1, %c0_i32 : i32
    %1 = arith.extui %0 : i1 to i32
    %c0_i32_0 = arith.constant 0 : i32
    %2 = arith.cmpi ne, %1, %c0_i32_0 : i32
    scf.if %2 {
      %cst_18 = arith.constant 0.000000e+00 : f32
      %25 = vector.broadcast %cst_18 : f32 to vector<16x32xf32>
      %c0_19 = arith.constant 0 : index
      %c0_20 = arith.constant 0 : index
      %26 = vector.load %arg8[%c0_19, %c0_20] : memref<16x32xf32, #tpu.memory_space<vmem>>, vector<16x32xf32>
      tpu.vector_store %arg8[%c0_19, %c0_20], %25 {strides = array<i32>} : memref<16x32xf32, #tpu.memory_space<vmem>>, vector<16x32xf32>,
    } else {
    }
    %c0 = arith.constant 0 : index
    %c0_1 = arith.constant 0 : index
    %3 = vector.load %arg2[%c0, %c0_1] : memref<16x32xf32, #tpu.memory_space<vmem>>, vector<16x32xf32>
    %c0_2 = arith.constant 0 : index
    %c0_3 = arith.constant 0 : index
    %4 = vector.load %arg3[%c0_2, %c0_3] : memref<128x32xf32, #tpu.memory_space<vmem>>, vector<128x32xf32>
    %cst = arith.constant dense<0.000000e+00> : vector<16x128xf32>
    %5 = tpu.matmul %3, %4, %cst {dimension_numbers = #tpu.dot_dimension_numbers<[1], [1], [0], [0], [0, 0, 1, 0], [], []>} : vector<16x32xf32>, vector<128x32xf32>, vector<16x128xf32> -> vector<16x128xf32>
    %c0_4 = arith.constant 0 : index
    %c0_5 = arith.constant 0 : index
    %6 = vector.load %arg4[%c0_4, %c0_5] : memref<1x128xf32, #tpu.memory_space<vmem>>, vector<1x128xf32>
    %7 = vector.broadcast %6 : vector<1x128xf32> to vector<16x128xf32>
    %8 = arith.addf %5, %7 : vector<16x128xf32>
    %cst_6 = arith.constant 5.000000e-01 : f32
    %9 = vector.broadcast %cst_6 : f32 to vector<16x128xf32>
    %10 = arith.mulf %9, %8 : vector<16x128xf32>
    %cst_7 = arith.constant 0.707106769 : f32
    %11 = vector.broadcast %cst_7 : f32 to vector<16x128xf32>
    %12 = arith.mulf %8, %11 : vector<16x128xf32>
    %13 = math.erf %12 : vector<16x128xf32>
    %cst_8 = arith.constant 1.000000e+00 : f32
    %14 = vector.broadcast %cst_8 : f32 to vector<16x128xf32>
    %15 = arith.addf %14, %13 : vector<16x128xf32>
    %16 = arith.mulf %10, %15 : vector<16x128xf32>
    %c0_9 = arith.constant 0 : index
    %c0_10 = arith.constant 0 : index
    %17 = vector.load %arg8[%c0_9, %c0_10] : memref<16x32xf32, #tpu.memory_space<vmem>>, vector<16x32xf32>
    %c0_11 = arith.constant 0 : index
    %c0_12 = arith.constant 0 : index
    %18 = vector.load %arg5[%c0_11, %c0_12] : memref<128x32xf32, #tpu.memory_space<vmem>>, vector<128x32xf32>
    %cst_13 = arith.constant dense<0.000000e+00> : vector<16x32xf32>
    %19 = tpu.matmul %16, %18, %cst_13 {dimension_numbers = #tpu.dot_dimension_numbers<[1], [0], [0], [1], [0, 0, 1, 1], [], []>} : vector<16x128xf32>, vector<128x32xf32>, vector<16x32xf32> -> vector<16x32xf32>
    %20 = arith.addf %17, %19 : vector<16x32xf32>
    %c0_14 = arith.constant 0 : index
    %c0_15 = arith.constant 0 : index
    %21 = vector.load %arg8[%c0_14, %c0_15] : memref<16x32xf32, #tpu.memory_space<vmem>>, vector<16x32xf32>
    tpu.vector_store %arg8[%c0_14, %c0_15], %20 {strides = array<i32>} : memref<16x32xf32, #tpu.memory_space<vmem>>, vector<16x32xf32>,
    %c0_i32_16 = arith.constant 0 : i32
    %22 = arith.cmpi eq, %arg1, %c0_i32_16 : i32
    %23 = arith.extui %22 : i1 to i32
    %c0_i32_17 = arith.constant 0 : i32
    %24 = arith.cmpi ne, %23, %c0_i32_17 : i32
    scf.if %24 {
      %c0_18 = arith.constant 0 : index
      %c0_19 = arith.constant 0 : index
      %25 = vector.load %arg8[%c0_18, %c0_19] : memref<16x32xf32, #tpu.memory_space<vmem>>, vector<16x32xf32>
      %c0_20 = arith.constant 0 : index
      %c0_21 = arith.constant 0 : index
      %26 = vector.load %arg6[%c0_20, %c0_21] : memref<1x32xf32, #tpu.memory_space<vmem>>, vector<1x32xf32>
      %27 = vector.broadcast %26 : vector<1x32xf32> to vector<16x32xf32>
      %28 = arith.addf %25, %27 : vector<16x32xf32>
      %c0_22 = arith.constant 0 : index
      %c0_23 = arith.constant 0 : index
      %29 = vector.load %arg7[%c0_22, %c0_23] : memref<16x32xf32, #tpu.memory_space<vmem>>, vector<16x32xf32>
      tpu.vector_store %arg7[%c0_22, %c0_23], %28 {strides = array<i32>} : memref<16x32xf32, #tpu.memory_space<vmem>>, vector<16x32xf32>,
    } else {
    }
    return
  }
  func.func @transform_0(%arg0: i32, %arg1: i32) -> (i32, i32) {
    %c0_i32 = arith.constant 0 : i32
    %c0_i32_0 = arith.constant 0 : i32
    return %arg0, %c0_i32 : i32, i32
  }
  func.func @transform_1(%arg0: i32, %arg1: i32) -> (i32, i32) {
    %c0_i32 = arith.constant 0 : i32
    %c0_i32_0 = arith.constant 0 : i32
    return %arg1, %c0_i32 : i32, i32
  }
  func.func @transform_2(%arg0: i32, %arg1: i32) -> (i32, i32) {
    %c0_i32 = arith.constant 0 : i32
    %c0_i32_0 = arith.constant 0 : i32
    return %c0_i32, %arg1 : i32, i32
  }
  func.func @transform_3(%arg0: i32, %arg1: i32) -> (i32, i32) {
    %c0_i32 = arith.constant 0 : i32
    %c0_i32_0 = arith.constant 0 : i32
    return %arg1, %c0_i32 : i32, i32
  }
  func.func @transform_4(%arg0: i32, %arg1: i32) -> (i32, i32) {
    %c0_i32 = arith.constant 0 : i32
    %c0_i32_0 = arith.constant 0 : i32
    %c0_i32_1 = arith.constant 0 : i32
    return %c0_i32, %c0_i32_0 : i32, i32
  }
  func.func @transform_5(%arg0: i32, %arg1: i32) -> (i32, i32) {
    %c0_i32 = arith.constant 0 : i32
    %c0_i32_0 = arith.constant 0 : i32
    return %arg0, %c0_i32 : i32, i32
  }
}

</mosaic_0001>

<bundles_post_ra>
// kernel: tpu_custom_call.1
= control target key start
LH: loop header
LB: loop body
LE: loop exit
PB: predicated region body
PF: predicated region fallthrough
CT: control target
= control target key end

     0   :  { %vm25_vm0 = vcmask 261120   ;;  %s567_s0 = inlined_call_operand.vmem [shape: f32[16,32], index: 0, kind: input, shape index: {}]   ;;  %s568_s1 = inlined_call_operand.vmem [shape: f32[128,32], index: 1, kind: input, shape index: {}]   ;;  %s569_s2 = inlined_call_operand.vmem [shape: f32[1,128], index: 2, kind: input, shape index: {}]   ;;  %s570_s3 = inlined_call_operand.vmem [shape: f32[128,32], index: 3, kind: input, shape index: {}]   ;;  %s571_s4 = inlined_call_operand.vmem [shape: f32[1,32], index: 4, kind: input, shape index: {}]   ;;  %s572_s5 = inlined_call_operand.hbm [shape: f32[16,32], index: 5, kind: output, shape index: {}]  }
   0x1   :  { %v45_v0 = vld [vmem:[%s568_s1 + $0x78] sm:$0xff]  ;;  %v44_v1 = vld [vmem:[%s568_s1 + $0x70] sm:$0xff] }
   0x2   :  { %292 = vmatpush.xpose.msk.msra.mxu0 %vm25_vm0, %v45_v0  ;;  %312 = vmatpush.xpose.msk.msra.mxu2 %vm25_vm0, %v45_v0 }
   0x3   :  { %10 = vsyncpa [#allocation4], 0  ;;  %v43_v2 = vld [vmem:[%s568_s1 + $0x68] sm:$0xff]  ;;  %v42_v3 = vld [vmem:[%s568_s1 + $0x60] sm:$0xff]  ;;  %s365_s9 = smov [#allocation3]   ;;  %s280_s13 = sshll.u32 %s572_s5, 4  ;;  %s281_s13 = int_to_ptr.hbm [resolvable:$true] %s280_s13 }
   0x4   :  { %v41_v4 = vld [vmem:[%s568_s1 + $0x58] sm:$0xff]  ;;  %v40_v5 = vld [vmem:[%s568_s1 + $0x50] sm:$0xff]  ;;  %v39_v6 = vld [vmem:[%s568_s1 + $0x48] sm:$0xff]  ;;  %s278_s10 = sshll.u32 %s365_s9, 4  ;;  %s367_s14 = smov 8   ;;  %s279_s10 = int_to_ptr.vmem [resolvable:$true] %s278_s10 }
   0x5   :  { %v38_v7 = vld [vmem:[%s568_s1 + $0x40] sm:$0xff]  ;;  %v37_v8 = vld [vmem:[%s568_s1 + $0x38] sm:$0xff]  ;;  %v36_v9 = vld [vmem:[%s568_s1 + $0x30] sm:$0xff] }
   0x6   :  { %293 = vmatpush.xpose.msk.msra.mxu0 %vm25_vm0, %v44_v1  ;;  %313 = vmatpush.xpose.msk.msra.mxu2 %vm25_vm0, %v44_v1  ;;  %v35_v10 = vld [vmem:[%s568_s1 + $0x28] sm:$0xff]  ;;  %v34_v11 = vld [vmem:[%s568_s1 + $0x20] sm:$0xff]  ;;  %v33_v12 = vld [vmem:[%s568_s1 + $0x18] sm:$0xff] }
   0x7   :  { %v32_v13 = vld [vmem:[%s568_s1 + $0x10] sm:$0xff]  ;;  %v31_v14 = vld [vmem:[%s568_s1 + $0x8] sm:$0xff]  ;;  %v30_v15 = vld [vmem:[%s568_s1] sm:$0xff] }
   0x8   :  { %v28_v16 = vld [vmem:[%s567_s0] sm:$0xff]  ;;  %v29_v17 = vld [vmem:[%s567_s0 + $0x8] sm:$0xff]  ;;  %v233_v18 = vld [vmem:[%s570_s3 + $0x78] sm:$0xff] }
   0x9   :  { %234 = vmatpush.msra.mxu1 %v233_v18  ;;  %v232_v19 = vld [vmem:[%s570_s3 + $0x70] sm:$0xff]  ;;  %v231_v20 = vld [vmem:[%s570_s3 + $0x68] sm:$0xff]  ;;  %v230_v21 = vld [vmem:[%s570_s3 + $0x60] sm:$0xff] }
   0xa   :  { %294 = vmatpush.xpose.msk.msra.mxu0 %vm25_vm0, %v43_v2  ;;  %314 = vmatpush.xpose.msk.msra.mxu2 %vm25_vm0, %v43_v2  ;;  %v332_v22 = vld [vmem:[%s569_s2] ss:$0 sm:$0xff]  ;;  %v229_v23 = vld [vmem:[%s570_s3 + $0x58] sm:$0xff]  ;;  %v228_v25 = vld [vmem:[%s570_s3 + $0x50] sm:$0xff] }
   0xb   :  { %235 = vmatpush.msra.mxu1 %v232_v19  ;;  %v227_v27 = vld [vmem:[%s570_s3 + $0x48] sm:$0xff]  ;;  %v226_v29 = vld [vmem:[%s570_s3 + $0x40] sm:$0xff]  ;;  %v225_v30 = vld [vmem:[%s570_s3 + $0x38] sm:$0xff] }
   0xc   :  { %v224_v33 = vld [vmem:[%s570_s3 + $0x30] sm:$0xff]  ;;  %v223_v36 = vld [vmem:[%s570_s3 + $0x28] sm:$0xff]  ;;  %v222_v39 = vld [vmem:[%s570_s3 + $0x20] sm:$0xff] }
   0xd   :  { %236 = vmatpush.msra.mxu1 %v231_v20  ;;  %v221_v43 = vld [vmem:[%s570_s3 + $0x18] sm:$0xff]  ;;  %v220_v47 = vld [vmem:[%s570_s3 + $0x10] sm:$0xff]  ;;  %v219_v52 = vld [vmem:[%s570_s3 + $0x8] sm:$0xff] }
   0xe   :  { %295 = vmatpush.xpose.msk.msra.mxu0 %vm25_vm0, %v42_v3  ;;  %315 = vmatpush.xpose.msk.msra.mxu2 %vm25_vm0, %v42_v3  ;;  %v218_v56 = vld [vmem:[%s570_s3] sm:$0xff] }
   0xf   :  { %237 = vmatpush.msra.mxu1 %v230_v21 }
  0x11   :  { %238 = vmatpush.msra.mxu1 %v229_v23 }
  0x12   :  { %296 = vmatpush.xpose.msk.msra.mxu0 %vm25_vm0, %v41_v4  ;;  %316 = vmatpush.xpose.msk.msra.mxu2 %vm25_vm0, %v41_v4 }
  0x13   :  { %239 = vmatpush.msra.mxu1 %v228_v25 }
  0x15   :  { %240 = vmatpush.msra.mxu1 %v227_v27 }
  0x16   :  { %297 = vmatpush.xpose.msk.msra.mxu0 %vm25_vm0, %v40_v5  ;;  %317 = vmatpush.xpose.msk.msra.mxu2 %vm25_vm0, %v40_v5 }
  0x17   :  { %241 = vmatpush.msra.mxu1 %v226_v29 }
  0x19   :  { %242 = vmatpush.msra.mxu1 %v225_v30 }
  0x1a   :  { %298 = vmatpush.xpose.msk.msra.mxu0 %vm25_vm0, %v39_v6  ;;  %318 = vmatpush.xpose.msk.msra.mxu2 %vm25_vm0, %v39_v6 }
  0x1b   :  { %243 = vmatpush.msra.mxu1 %v224_v33 }
  0x1d   :  { %244 = vmatpush.msra.mxu1 %v223_v36 }
  0x1e   :  { %299 = vmatpush.xpose.msk.msra.mxu0 %vm25_vm0, %v38_v7  ;;  %319 = vmatpush.xpose.msk.msra.mxu2 %vm25_vm0, %v38_v7 }
  0x1f   :  { %245 = vmatpush.msra.mxu1 %v222_v39 }
  0x21   :  { %246 = vmatpush.msra.mxu1 %v221_v43 }
  0x22   :  { %300 = vmatpush.xpose.msk.msra.mxu0 %vm25_vm0, %v37_v8  ;;  %320 = vmatpush.xpose.msk.msra.mxu2 %vm25_vm0, %v37_v8 }
  0x23   :  { %247 = vmatpush.msra.mxu1 %v220_v47 }
  0x25   :  { %248 = vmatpush.msra.mxu1 %v219_v52 }
  0x26   :  { %301 = vmatpush.xpose.msk.msra.mxu0 %vm25_vm0, %v36_v9  ;;  %321 = vmatpush.xpose.msk.msra.mxu2 %vm25_vm0, %v36_v9 }
  0x27   :  { %249 = vmatpush.msra.mxu1 %v218_v56 }
  0x2a   :  { %302 = vmatpush.xpose.msk.msra.mxu0 %vm25_vm0, %v35_v10  ;;  %322 = vmatpush.xpose.msk.msra.mxu2 %vm25_vm0, %v35_v10 }
  0x2e   :  { %303 = vmatpush.xpose.msk.msra.mxu0 %vm25_vm0, %v34_v11  ;;  %323 = vmatpush.xpose.msk.msra.mxu2 %vm25_vm0, %v34_v11 }
  0x32   :  { %304 = vmatpush.xpose.msk.msra.mxu0 %vm25_vm0, %v33_v12  ;;  %324 = vmatpush.xpose.msk.msra.mxu2 %vm25_vm0, %v33_v12 }
  0x36   :  { %305 = vmatpush.xpose.msk.msra.mxu0 %vm25_vm0, %v32_v13  ;;  %325 = vmatpush.xpose.msk.msra.mxu2 %vm25_vm0, %v32_v13 }
  0x3a   :  { %306 = vmatpush.xpose.msk.msra.mxu0 %vm25_vm0, %v31_v14  ;;  %326 = vmatpush.xpose.msk.msra.mxu2 %vm25_vm0, %v31_v14  ;;  %v364_v14 = vmov 0.0  }
  0x3b   :  { %26 = vst.msk [vmem:[#allocation2] sm:$0xff] %vm25_vm0, %v364_v14 }
  0x3c   :  { %27 = vst.msk [vmem:[#allocation2 + $0x8] sm:$0xff] %vm25_vm0, %v364_v14 }
  0x3e   :  { %307 = vmatpush.xpose.msk.msra.mxu0 %vm25_vm0, %v30_v15  ;;  %327 = vmatpush.xpose.msk.msra.mxu2 %vm25_vm0, %v30_v15 }
  0x41   :  { %308 = vmatmul.msk.f32.vlgmr.msra.gmra.mxu0 %vm25_vm0, %v28_v16  ;;  %309 = vmatmul.msk.f32.vlgmr.msra.gmra.mxu2 %vm25_vm0, %v29_v17 }
  0xbe   :  { %v122_v24 = vpop.f32.mrf.mxu0 }
  0xbf   :  { %v507_v26 = vadd.f32 %v332_v22, %v122_v24 }
  0xc1   :  { %v513_v28 = vmul.f32 0.70710677, %v507_v26 }
  0xc3   :  { %v132_v31 = vmul.f32 %v513_v28, %v513_v28 }
  0xc4   :  { %v125_v32 = vpop.f32.mrf.mxu2 }
  0xc5   :  { %v133_v34 = vmin.f32 %v132_v31, 16.0  ;;  %v526_v35 = vadd.f32 %v332_v22, %v125_v32 }
  0xc7   :  { %v134_v37 = vmul.f32 2.1237322e-06, %v133_v34  ;;  %v532_v38 = vmul.f32 0.70710677, %v526_v35  ;;  %v145_v40 = vmul.f32 3.8918573e-05, %v133_v34 }
  0xc9   :  { %v135_v41 = vadd.f32 0.00028619796, %v134_v37  ;;  %v172_v42 = vmul.f32 %v532_v38, %v532_v38  ;;  %v146_v44 = vadd.f32 0.001143296, %v145_v40 }
  0xcb   :  { %v136_v45 = vmul.f32 %v135_v41, %v133_v34  ;;  %v173_v46 = vmin.f32 %v172_v42, 16.0  ;;  %v147_v48 = vmul.f32 %v146_v44, %v133_v34 }
  0xcd   :  { %v174_v49 = vmul.f32 2.1237322e-06, %v173_v46  ;;  %v185_v50 = vmul.f32 3.8918573e-05, %v173_v46  ;;  %v137_v51 = vadd.f32 0.0036580483, %v136_v45 }
  0xce   :  { %v148_v53 = vadd.f32 0.014752088, %v147_v48  ;;  %v128_v48 = vmul.f32 0.5, %v507_v26  ;;  %v333_v26 = vld [vmem:[%s571_s4] ss:$0 sm:$0xff]  ;;  %s366_s4 = smov 128  }
  0xcf   :  { %v175_v54 = vadd.f32 0.00028619796, %v174_v49  ;;  %v186_v55 = vadd.f32 0.001143296, %v185_v50  ;;  %v138_v60 = vmul.f32 %v137_v51, %v133_v34 }
  0xd0   :  { %v149_v57 = vmul.f32 %v148_v53, %v133_v34 }
  0xd1   :  { %v176_v58 = vmul.f32 %v175_v54, %v173_v46  ;;  %v187_v59 = vmul.f32 %v186_v55, %v173_v46  ;;  %v139_v2 = vadd.f32 0.05243302, %v138_v60  ;;  %v129_v55 = vmul.f32 0.5, %v526_v35 }
  0xd2   :  { %v150_v61 = vadd.f32 0.112945676, %v149_v57  ;;  %v216_v57 = vld [vmem:[#allocation2] sm:$0xff] }
  0xd3   :  { %v177_v62 = vadd.f32 0.0036580483, %v176_v58  ;;  %v188_v63 = vadd.f32 0.014752088, %v187_v59  ;;  %v140_v8 = vmul.f32 %v139_v2, %v133_v34 }
  0xd4   :  { %v151_v0 = vmul.f32 %v150_v61, %v133_v34 }
  0xd5   :  { %v189_v1 = vmul.f32 %v188_v63, %v173_v46  ;;  %v178_v4 = vmul.f32 %v177_v62, %v173_v46  ;;  %v141_v13 = vadd.f32 0.18741608, %v140_v8 }
  0xd6   :  { %v152_v3 = vadd.f32 0.4994258, %v151_v0 }
  0xd7   :  { %v190_v5 = vadd.f32 0.112945676, %v189_v1  ;;  %v179_v10 = vadd.f32 0.05243302, %v178_v4  ;;  %v142_v18 = vmul.f32 %v141_v13, %v133_v34 }
  0xd8   :  { %v153_v6 = vmul.f32 %v152_v3, %v133_v34 }
  0xd9   :  { %v191_v7 = vmul.f32 %v190_v5, %v173_v46  ;;  %v180_v15 = vmul.f32 %v179_v10, %v173_v46  ;;  %v143_v22 = vadd.f32 1.1283791, %v142_v18 }
  0xda   :  { %v154_v9 = vadd.f32 1.0, %v153_v6 }
  0xdb   :  { %v192_v11 = vadd.f32 0.4994258, %v191_v7  ;;  %v181_v19 = vadd.f32 0.18741608, %v180_v15  ;;  %v144_v32 = vmul.f32 %v143_v22, %v513_v28 }
  0xdc   :  { %334 = vrcp.f32 %v154_v9  ;;  %v166_v23 = vand.u32 2147483648, %v154_v9  ;;  %v164_v29 = vand.u32 2147483647, %v154_v9  ;;  %vm160_vm2 = vweird.f32 %v154_v9 }
  0xdd   :  { %v193_v12 = vmul.f32 %v192_v11, %v173_v46  ;;  %v182_v25 = vmul.f32 %v181_v19, %v173_v46 }
  0xde   :  { %v167_v33 = vor.u32 1.1754944e-38, %v166_v23  ;;  %vm165_vm4 = vcmp.eq.f32.partialorder %v164_v29, 8.507059e+37 }
  0xdf   :  { %v194_v16 = vadd.f32 1.0, %v193_v12  ;;  %v183_v37 = vadd.f32 1.1283791, %v182_v25 }
  0xe1   :  { %336 = vrcp.f32 %v194_v16  ;;  %v206_v39 = vand.u32 2147483648, %v194_v16  ;;  %v204_v42 = vand.u32 2147483647, %v194_v16  ;;  %vm200_vm6 = vweird.f32 %v194_v16 }
  0xe2   :  { %v335_v17 = vpop.eup %334  ;;  %v184_v47 = vmul.f32 %v183_v37, %v532_v38  ;;  %v217_v38 = vld [vmem:[#allocation2 + $0x8] sm:$0xff] }
  0xe3   :  { %v156_v20 = vmul.f32 %v335_v17, %v154_v9  ;;  %vm161_vm1 = vweird.f32 %v335_v17  ;;  %v207_v46 = vor.u32 1.1754944e-38, %v206_v39  ;;  %vm205_vm8 = vcmp.eq.f32.partialorder %v204_v42, 8.507059e+37 }
  0xe4   :  { %vm162_vm3 = vmor %vm160_vm2, %vm161_vm1 }
  0xe5   :  { %v157_v21 = vsub.f32 1.0, %v156_v20 }
  0xe7   :  { %v337_v24 = vpop.eup %336  ;;  %v158_v27 = vmul.f32 %v335_v17, %v157_v21 }
  0xe8   :  { %v196_v30 = vmul.f32 %v337_v24, %v194_v16  ;;  %vm201_vm5 = vweird.f32 %v337_v24 }
  0xe9   :  { %v159_v31 = vadd.f32 %v335_v17, %v158_v27  ;;  %vm202_vm7 = vmor %vm200_vm6, %vm201_vm5 }
  0xea   :  { %v197_v36 = vsub.f32 1.0, %v196_v30 }
  0xeb   :  { %v163_v34 = vsel %vm162_vm3, %v335_v17, %v159_v31 }
  0xec   :  { %v168_v40 = vsel %vm165_vm4, %v167_v33, %v163_v34  ;;  %v198_v41 = vmul.f32 %v337_v24, %v197_v36 }
  0xed   :  { %v169_v43 = vmul.f32 %v168_v40, %v144_v32 }
  0xee   :  { %v199_v44 = vadd.f32 %v337_v24, %v198_v41 }
  0xef   :  { %v310_v45 = vclamps-f32 %v169_v43, 1.0 }
  0xf0   :  { %v203_v28 = vsel %vm202_vm7, %v337_v24, %v199_v44 }
  0xf1   :  { %v212_v49 = vadd.f32 1.0, %v310_v45  ;;  %v208_v50 = vsel %vm205_vm8, %v207_v46, %v203_v28 }
  0xf2   :  { %v209_v51 = vmul.f32 %v208_v50, %v184_v47 }
  0xf3   :  { %v214_v52 = vmul.f32 %v212_v49, %v128_v48 }
  0xf4   :  { %v311_v53 = vclamps-f32 %v209_v51, 1.0 }
  0xf5   :  { %250 = vmatmul.f32.vlgmr.msra.gmra.mxu1 %v214_v52 }
  0xf6   :  { %v213_v54 = vadd.f32 1.0, %v311_v53 }
  0xf8   :  { %v215_v56 = vmul.f32 %v213_v54, %v129_v55 }
  0xfd   :  { %253 = vmatmul.f32.gmra.mxu1 %v215_v56 }
 0x172   :  { %v251_v58 = vpop.f32.mrf.mxu1 }
 0x173   :  { %v257_v59 = vadd.f32 %v251_v58, %v216_v57 }
 0x175   :  { %259 = vst.msk [vmem:[#allocation2] sm:$0xff] %vm25_vm0, %v257_v59 }
 0x17a   :  { %v254_v60 = vpop.f32.mrf.mxu1 }
 0x17b   :  { %v258_v61 = vadd.f32 %v254_v60, %v217_v38 }
 0x17c   :  { %v264_v62 = vld [vmem:[#allocation2] sm:$0xff] }
 0x17d   :  { %260 = vst.msk [vmem:[#allocation2 + $0x8] sm:$0xff] %vm25_vm0, %v258_v61  ;;  %v270_v63 = vadd.f32 %v333_v26, %v264_v62 }
 0x17f   :  { %272 = vst.msk [vmem:[#allocation3] sm:$0xff] %vm25_vm0, %v270_v63 }
 0x184   :  { %v265_v35 = vld [vmem:[#allocation2 + $0x8] sm:$0xff] }
 0x185   :  { %v271_v0 = vadd.f32 %v333_v26, %v265_v35 }
 0x187   :  { %273 = vst.msk [vmem:[#allocation3 + $0x8] sm:$0xff] %vm25_vm0, %v271_v0 }
 0x188   :  { %286 = dma.vmem_to_hbm [thread:$0]  %s279_s10, 256, %s281_s13, [#allocation4], %s366_s4, %s366_s4, %s367_s14  }
 0x189   :  { %362 = dma.done.wait [#allocation4], 256  }
 0x18a   :  { %363 = vsyncadd [#allocation4], 4294967040 }
 0x18b   :  { %291 = vsyncpa [#allocation4], 1 }

</bundles_post_ra>
